<compile_context>
chip_gen: v6e
topology: v6e:2x2x1
jax: 0.10.0
libtpu: 0.0.40
codegen_flags: <defaults>
</compile_context>

<pallas_src>
import functools

import jax
import jax.numpy as jnp
from jax.experimental import pallas as pl
from jax.experimental.pallas import tpu as pltpu


def _round_up(n, m):
    return ((n + m - 1) // m) * m


def actor_kernel(x_ref, w1_ref, w2_ref, wh_ref, b12_ref, bh_ref, out_ref,
                 *, matmul_dtype):
    x = x_ref[...].astype(matmul_dtype)
    b12 = b12_ref[...]                      # [2, layer_dim] packed (b1; b2)

    # fc1 + relu  (MXU, f32 accumulate)
    h1 = jnp.dot(x, w1_ref[...].astype(matmul_dtype),
                 preferred_element_type=jnp.float32)
    h1 = jnp.maximum(h1 + b12[0:1, :], 0.0)

    # fc2 + relu
    h2 = jnp.dot(h1.astype(matmul_dtype), w2_ref[...].astype(matmul_dtype),
                 preferred_element_type=jnp.float32)
    h2 = jnp.maximum(h2 + b12[1:2, :], 0.0)

    # fused alpha|beta head: one matmul over the padded [layer_dim, 128] weight
    z = jnp.dot(h2.astype(matmul_dtype), wh_ref[...].astype(matmul_dtype),
                preferred_element_type=jnp.float32) + bh_ref[...]

    # softplus(z) + 1, numerically stable; epilogue kept in f32 (v5e has no
    # bf16 VPU/EUP).  Lane-dense full-width store (out last dim is 128-aligned).
    out_ref[...] = jnp.maximum(z, 0.0) + jnp.log1p(jnp.exp(-jnp.abs(z))) + 1.0


def actor_forward(x, params, *, out_dims, batch_tile=512,
                  matmul_dtype=jnp.float32):
    """x: [B, input_dims] f32.  params: packed dict from prepare_params().
    Returns (alpha, beta), each [B, out_dims]."""
    B, in_dims = x.shape
    w1, w2, wh, b12, bh = (params["w1"], params["w2"], params["wh"],
                           params["b12"], params["bh"])
    out_pad = wh.shape[1]

    # Batch tile: multiple of 8 sublanes, capped so double-buffered x/out tiles
    # stay tiny even under v7x's 64 MiB VMEM.
    tb = min(batch_tile, _round_up(B, 8))
    grid = (pl.cdiv(B, tb),)

    # Weights/biases: constant block index -> loaded once, VMEM-resident
    # across the whole batch grid.
    resident = lambda arr: pl.BlockSpec(arr.shape, lambda i: (0, 0))

    kernel = functools.partial(actor_kernel, matmul_dtype=matmul_dtype)

    out = pl.pallas_call(
        kernel,
        out_shape=jax.ShapeDtypeStruct((B, out_pad), jnp.float32),
        grid=grid,
        in_specs=[
            pl.BlockSpec((tb, in_dims), lambda i: (i, 0)),   # x blocked on batch
            resident(w1), resident(w2), resident(wh),
            resident(b12), resident(bh),
        ],
        out_specs=pl.BlockSpec((tb, out_pad), lambda i: (i, 0)),
        compiler_params=pltpu.CompilerParams(
            dimension_semantics=("parallel",)),
    )(x, w1, w2, wh, b12, bh)

    alpha = out[:, :out_dims]
    beta = out[:, out_dims:2 * out_dims]
    return alpha, beta


def prepare_params(raw, lanes=128):
    """Pack torch-like params (w1,b1,w2,b2,wa,ba,wb,bb; weights stored [in,out])
    into the fused kernel layout.  Done once, outside the per-call jit path."""
    out_dims = raw["wa"].shape[1]
    wh = jnp.concatenate([raw["wa"], raw["wb"]], axis=1)    # [L, 2*out]
    bh = jnp.concatenate([raw["ba"], raw["bb"]], axis=1)    # [1, 2*out]
    out_pad = _round_up(2 * out_dims, lanes)
    pad = out_pad - 2 * out_dims
    if pad:
        wh = jnp.pad(wh, ((0, 0), (0, pad)))
        bh = jnp.pad(bh, ((0, 0), (0, pad)))
    b12 = jnp.concatenate([raw["b1"], raw["b2"]], axis=0)   # [2, L]
    return dict(w1=raw["w1"], w2=raw["w2"], wh=wh, b12=b12, bh=bh)


def init_params(key, input_dims, layer_dim, output_dims):
    """Deterministic init mimicking torch.nn.Linear defaults.
    Weights stored as [in, out] (pre-transposed vs torch)."""
    ks = jax.random.split(key, 8)

    def lin(kw, kb, fan_in, fan_out):
        bound = 1.0 / jnp.sqrt(fan_in)
        w = jax.random.uniform(kw, (fan_in, fan_out), jnp.float32, -bound, bound)
        b = jax.random.uniform(kb, (1, fan_out), jnp.float32, -bound, bound)
        return w, b

    w1, b1 = lin(ks[0], ks[1], input_dims, layer_dim)
    w2, b2 = lin(ks[2], ks[3], layer_dim, layer_dim)
    wa, ba = lin(ks[4], ks[5], layer_dim, output_dims)
    wb, bb = lin(ks[6], ks[7], layer_dim, output_dims)
    return dict(w1=w1, b1=b1, w2=w2, b2=b2, wa=wa, ba=ba, wb=wb, bb=bb)


if __name__ == "__main__":
    # Small shapes consistent with the module's forward pass.
    batch = 8
    input_dims = 16
    layer_dim = 32
    output_dims = 4

    key = jax.random.PRNGKey(0)
    k_x, k_p = jax.random.split(key)

    x = jax.random.normal(k_x, (batch, input_dims), jnp.float32)
    raw = init_params(k_p, input_dims, layer_dim, output_dims)
    params = prepare_params(raw)          # one-time packing / padding

    fwd = jax.jit(lambda xx, pp: actor_forward(xx, pp, out_dims=output_dims))
    alpha, beta = fwd(x, params)
    jax.block_until_ready((alpha, beta))

    # Reference check in plain JAX against the unpacked params.
    def ref(x, p):
        h1 = jax.nn.relu(x @ p["w1"] + p["b1"])
        h2 = jax.nn.relu(h1 @ p["w2"] + p["b2"])
        a = jax.nn.softplus(h2 @ p["wa"] + p["ba"]) + 1.0
        b = jax.nn.softplus(h2 @ p["wb"] + p["bb"]) + 1.0
        return a, b

    ra, rb = ref(x, raw)
    assert alpha.shape == (batch, output_dims) and beta.shape == (batch, output_dims)
    assert jnp.allclose(alpha, ra, atol=1e-5, rtol=1e-5)
    assert jnp.allclose(beta, rb, atol=1e-5, rtol=1e-5)
    assert bool(jnp.all(alpha > 1.0)) and bool(jnp.all(beta > 1.0))

    print("KERNEL_OK")
</pallas_src>

<mosaic_0001>
module attributes {stable_mosaic.version = 11 : i64} {
  func.func @actor_kernel(%arg0: i32, %arg1: memref<8x16xf32, #tpu.memory_space<vmem>>, %arg2: memref<16x32xf32, #tpu.memory_space<vmem>>, %arg3: memref<32x32xf32, #tpu.memory_space<vmem>>, %arg4: memref<32x128xf32, #tpu.memory_space<vmem>>, %arg5: memref<2x32xf32, #tpu.memory_space<vmem>>, %arg6: memref<1x128xf32, #tpu.memory_space<vmem>>, %arg7: memref<8x128xf32, #tpu.memory_space<vmem>>) attributes {dimension_semantics = [#tpu.dimension_semantics<parallel>], iteration_bounds = array<i64: 1>, scalar_prefetch = 0 : i64, scratch_operands = 0 : i64, tpu.core_type = #tpu.core_type<tc>, window_params = [{transform_indices = @transform_0, window_bounds = array<i64: 8, 16>}, {pipeline_mode = #tpu.pipeline_mode<synchronous>, transform_indices = @transform_1, window_bounds = array<i64: 16, 32>}, {pipeline_mode = #tpu.pipeline_mode<synchronous>, transform_indices = @transform_2, window_bounds = array<i64: 32, 32>}, {pipeline_mode = #tpu.pipeline_mode<synchronous>, transform_indices = @transform_3, window_bounds = array<i64: 32, 128>}, {pipeline_mode = #tpu.pipeline_mode<synchronous>, transform_indices = @transform_4, window_bounds = array<i64: 2, 32>}, {pipeline_mode = #tpu.pipeline_mode<synchronous>, transform_indices = @transform_5, window_bounds = array<i64: 1, 128>}, {transform_indices = @transform_6, window_bounds = array<i64: 8, 128>}]} {
    %c0 = arith.constant 0 : index
    %c0_0 = arith.constant 0 : index
    %0 = vector.load %arg1[%c0, %c0_0] : memref<8x16xf32, #tpu.memory_space<vmem>>, vector<8x16xf32>
    %c0_1 = arith.constant 0 : index
    %c0_2 = arith.constant 0 : index
    %1 = vector.load %arg5[%c0_1, %c0_2] : memref<2x32xf32, #tpu.memory_space<vmem>>, vector<2x32xf32>
    %c0_3 = arith.constant 0 : index
    %c0_4 = arith.constant 0 : index
    %2 = vector.load %arg2[%c0_3, %c0_4] : memref<16x32xf32, #tpu.memory_space<vmem>>, vector<16x32xf32>
    %cst = arith.constant dense<0.000000e+00> : vector<8x32xf32>
    %3 = tpu.matmul %0, %2, %cst {dimension_numbers = #tpu.dot_dimension_numbers<[1], [0], [0], [1], [0, 0, 1, 1], [], []>} : vector<8x16xf32>, vector<16x32xf32>, vector<8x32xf32> -> vector<8x32xf32>
    %4 = vector.extract_strided_slice %1 {offsets = [0, 0], sizes = [1, 32], strides = [1, 1]} : vector<2x32xf32> to vector<1x32xf32>
    %5 = vector.broadcast %4 : vector<1x32xf32> to vector<8x32xf32>
    %6 = arith.addf %3, %5 : vector<8x32xf32>
    %cst_5 = arith.constant 0.000000e+00 : f32
    %7 = vector.broadcast %cst_5 : f32 to vector<8x32xf32>
    %8 = arith.maximumf %6, %7 : vector<8x32xf32>
    %c0_6 = arith.constant 0 : index
    %c0_7 = arith.constant 0 : index
    %9 = vector.load %arg3[%c0_6, %c0_7] : memref<32x32xf32, #tpu.memory_space<vmem>>, vector<32x32xf32>
    %cst_8 = arith.constant dense<0.000000e+00> : vector<8x32xf32>
    %10 = tpu.matmul %8, %9, %cst_8 {dimension_numbers = #tpu.dot_dimension_numbers<[1], [0], [0], [1], [0, 0, 1, 1], [], []>} : vector<8x32xf32>, vector<32x32xf32>, vector<8x32xf32> -> vector<8x32xf32>
    %11 = vector.extract_strided_slice %1 {offsets = [1, 0], sizes = [1, 32], strides = [1, 1]} : vector<2x32xf32> to vector<1x32xf32>
    %12 = vector.broadcast %11 : vector<1x32xf32> to vector<8x32xf32>
    %13 = arith.addf %10, %12 : vector<8x32xf32>
    %cst_9 = arith.constant 0.000000e+00 : f32
    %14 = vector.broadcast %cst_9 : f32 to vector<8x32xf32>
    %15 = arith.maximumf %13, %14 : vector<8x32xf32>
    %c0_10 = arith.constant 0 : index
    %c0_11 = arith.constant 0 : index
    %16 = vector.load %arg4[%c0_10, %c0_11] : memref<32x128xf32, #tpu.memory_space<vmem>>, vector<32x128xf32>
    %cst_12 = arith.constant dense<0.000000e+00> : vector<8x128xf32>
    %17 = tpu.matmul %15, %16, %cst_12 {dimension_numbers = #tpu.dot_dimension_numbers<[1], [0], [0], [1], [0, 0, 1, 1], [], []>} : vector<8x32xf32>, vector<32x128xf32>, vector<8x128xf32> -> vector<8x128xf32>
    %c0_13 = arith.constant 0 : index
    %c0_14 = arith.constant 0 : index
    %18 = vector.load %arg6[%c0_13, %c0_14] : memref<1x128xf32, #tpu.memory_space<vmem>>, vector<1x128xf32>
    %19 = vector.broadcast %18 : vector<1x128xf32> to vector<8x128xf32>
    %20 = arith.addf %17, %19 : vector<8x128xf32>
    %cst_15 = arith.constant 0.000000e+00 : f32
    %21 = vector.broadcast %cst_15 : f32 to vector<8x128xf32>
    %22 = arith.maximumf %20, %21 : vector<8x128xf32>
    %23 = math.absf %20 : vector<8x128xf32>
    %cst_16 = arith.constant 0.000000e+00 : f32
    %24 = vector.broadcast %cst_16 : f32 to vector<8x128xf32>
    %25 = arith.subf %24, %23 : vector<8x128xf32>
    %26 = math.exp %25 : vector<8x128xf32>
    %27 = math.log1p %26 : vector<8x128xf32>
    %28 = arith.addf %22, %27 : vector<8x128xf32>
    %cst_17 = arith.constant 1.000000e+00 : f32
    %29 = vector.broadcast %cst_17 : f32 to vector<8x128xf32>
    %30 = arith.addf %28, %29 : vector<8x128xf32>
    %c0_18 = arith.constant 0 : index
    %c0_19 = arith.constant 0 : index
    %31 = vector.load %arg7[%c0_18, %c0_19] : memref<8x128xf32, #tpu.memory_space<vmem>>, vector<8x128xf32>
    tpu.vector_store %arg7[%c0_18, %c0_19], %30 {strides = array<i32>} : memref<8x128xf32, #tpu.memory_space<vmem>>, vector<8x128xf32>,
    return
  }
  func.func @transform_0(%arg0: i32) -> (i32, i32) {
    %c0_i32 = arith.constant 0 : i32
    %c0_i32_0 = arith.constant 0 : i32
    return %arg0, %c0_i32 : i32, i32
  }
  func.func @transform_1(%arg0: i32) -> (i32, i32) {
    %c0_i32 = arith.constant 0 : i32
    %c0_i32_0 = arith.constant 0 : i32
    %c0_i32_1 = arith.constant 0 : i32
    return %c0_i32, %c0_i32_0 : i32, i32
  }
  func.func @transform_2(%arg0: i32) -> (i32, i32) {
    %c0_i32 = arith.constant 0 : i32
    %c0_i32_0 = arith.constant 0 : i32
    %c0_i32_1 = arith.constant 0 : i32
    return %c0_i32, %c0_i32_0 : i32, i32
  }
  func.func @transform_3(%arg0: i32) -> (i32, i32) {
    %c0_i32 = arith.constant 0 : i32
    %c0_i32_0 = arith.constant 0 : i32
    %c0_i32_1 = arith.constant 0 : i32
    return %c0_i32, %c0_i32_0 : i32, i32
  }
  func.func @transform_4(%arg0: i32) -> (i32, i32) {
    %c0_i32 = arith.constant 0 : i32
    %c0_i32_0 = arith.constant 0 : i32
    %c0_i32_1 = arith.constant 0 : i32
    return %c0_i32, %c0_i32_0 : i32, i32
  }
  func.func @transform_5(%arg0: i32) -> (i32, i32) {
    %c0_i32 = arith.constant 0 : i32
    %c0_i32_0 = arith.constant 0 : i32
    %c0_i32_1 = arith.constant 0 : i32
    return %c0_i32, %c0_i32_0 : i32, i32
  }
  func.func @transform_6(%arg0: i32) -> (i32, i32) {
    %c0_i32 = arith.constant 0 : i32
    %c0_i32_0 = arith.constant 0 : i32
    return %arg0, %c0_i32 : i32, i32
  }
}

</mosaic_0001>

<bundles_post_ra>
// kernel: _lambda_.1
= control target key start
LH: loop header
LB: loop body
LE: loop exit
PB: predicated region body
PF: predicated region fallthrough
CT: control target
= control target key end

     0   :  { %11 = vsyncpa [#allocation3], 0  ;;  %s605_s0 = inlined_call_operand.hbm [shape: f32[8,16], index: 0, kind: input, shape index: {}]   ;;  %s606_s1 = inlined_call_operand.hbm [shape: f32[16,32], index: 1, kind: input, shape index: {}]   ;;  %s607_s2 = inlined_call_operand.hbm [shape: f32[32,32], index: 2, kind: input, shape index: {}]   ;;  %s608_s3 = inlined_call_operand.hbm [shape: f32[32,128], index: 3, kind: input, shape index: {}]   ;;  %s609_s4 = inlined_call_operand.hbm [shape: f32[2,32], index: 4, kind: input, shape index: {}]   ;;  %s610_s5 = inlined_call_operand.vmem [shape: f32[1,128], index: 5, kind: input, shape index: {}]   ;;  %s611_s6 = inlined_call_operand.vmem [shape: f32[8,128], index: 6, kind: output, shape index: {}]  }
   0x1   :  { %12 = vsyncpa [#allocation5], 0 }
   0x2   :  { %13 = vsyncpa [#allocation8], 0  ;;  %s526_s21 = smov [#allocation4]  }
   0x3   :  { %s29_s22 = sshll.u32 %s526_s21, 4  ;;  %s30_s22 = int_to_ptr.vmem [resolvable:$true] %s29_s22 }
   0x4   :  { %s428_s23 = scalar_lea.vmem %s30_s22, 256  ;;  %p433_p1 = scmp.lt.s32.totalorder %s30_s22, %s30_s22 }
   0x5   :  { %p429_p0 = scmp.ne.s32.totalorder %s30_s22, %s428_s23  ;;  %p434_p2 = scmp.lt.s32.totalorder %s428_s23, %s428_s23 }
   0x7   :  { %p435_p3 = por %p434_p2, %p433_p1 }
   0x9   :  { %p436_p4 = pnand %p435_p3, %p429_p0 }
   0xb   :  { %439 = shalt.err (!%p436_p4)
}
   0xc   :  { %s527_s24 = smov 128   ;;  %s528_s25 = smov 8  }
   0xd   :  { %35 = dma.hbm_to_vmem [thread:$0]  %s606_s1, 256, %s30_s22, [#allocation5], %s527_s24, %s527_s24, %s528_s25  }
   0xe   :  { %s529_s28 = smov [#allocation7]   ;;  %s530_s30 = smov [#allocation2]  }
   0xf   :  { %s53_s29 = sshll.u32 %s529_s28, 4  ;;  %s20_s7 = sshll.u32 %s530_s30, 4  ;;  %s54_s29 = int_to_ptr.vmem [resolvable:$true] %s53_s29  ;;  %s21_s7 = int_to_ptr.vmem [resolvable:$true] %s20_s7 }
  0x10   :  { %s448_s8 = scalar_lea.vmem %s54_s29, 512  ;;  %p453_p6 = scmp.lt.s32.totalorder %s54_s29, %s54_s29 }
  0x11   :  { %p449_p5 = scmp.ne.s32.totalorder %s54_s29, %s448_s8  ;;  %p454_p7 = scmp.lt.s32.totalorder %s448_s8, %s448_s8 }
  0x13   :  { %p455_p8 = por %p454_p7, %p453_p6 }
  0x15   :  { %p456_p9 = pnand %p455_p8, %p449_p5 }
  0x17   :  { %459 = shalt.err (!%p456_p9)
}
  0x18   :  { %59 = dma.hbm_to_vmem [thread:$0]  %s608_s3, 512, %s54_s29, [#allocation8], %s527_s24, %s527_s24, %s528_s25  }
  0x19   :  { %s468_s1 = scalar_lea.vmem %s21_s7, 128  ;;  %p473_p11 = scmp.lt.s32.totalorder %s21_s7, %s21_s7 }
  0x1a   :  { %p469_p10 = scmp.ne.s32.totalorder %s21_s7, %s468_s1  ;;  %p474_p12 = scmp.lt.s32.totalorder %s468_s1, %s468_s1 }
  0x1c   :  { %p475_p13 = por %p474_p12, %p473_p11 }
  0x1e   :  { %p476_p0 = pnand %p475_p13, %p469_p10 }
  0x20   :  { %479 = shalt.err (!%p476_p0)
}
  0x21   :  { %23 = dma.hbm_to_vmem [thread:$0]  %s605_s0, 128, %s21_s7, [#allocation3]  }
  0x22   :  { %s531_s13 = smov [#allocation6]   ;;  %s532_s15 = smov [#allocation9]  }
  0x23   :  { %s41_s14 = sshll.u32 %s531_s13, 4  ;;  %s66_s16 = sshll.u32 %s532_s15, 4  ;;  %s42_s14 = int_to_ptr.vmem [resolvable:$true] %s41_s14  ;;  %s67_s16 = int_to_ptr.vmem [resolvable:$true] %s66_s16 }
  0x24   :  { %s488_s17 = scalar_lea.vmem %s42_s14, 512  ;;  %p493_p2 = scmp.lt.s32.totalorder %s42_s14, %s42_s14 }
  0x25   :  { %p489_p1 = scmp.ne.s32.totalorder %s42_s14, %s488_s17  ;;  %p494_p3 = scmp.lt.s32.totalorder %s488_s17, %s488_s17 }
  0x27   :  { %p495_p4 = por %p494_p3, %p493_p2 }
  0x29   :  { %p496_p5 = pnand %p495_p4, %p489_p1 }
  0x2b   :  { %499 = shalt.err (!%p496_p5)
}
  0x2c   :  { %47 = dma.hbm_to_vmem [thread:$0]  %s607_s2, 512, %s42_s14, [#allocation5], %s527_s24, %s527_s24, %s528_s25  }
  0x2d   :  { %s508_s0 = scalar_lea.vmem %s67_s16, 32  ;;  %p513_p7 = scmp.lt.s32.totalorder %s67_s16, %s67_s16 }
  0x2e   :  { %p509_p6 = scmp.ne.s32.totalorder %s67_s16, %s508_s0  ;;  %p514_p8 = scmp.lt.s32.totalorder %s508_s0, %s508_s0 }
  0x30   :  { %p515_p9 = por %p514_p8, %p513_p7 }
  0x32   :  { %p516_p10 = pnand %p515_p9, %p509_p6 }
  0x34   :  { %519 = shalt.err (!%p516_p10)
}
  0x35   :  { %69 = dma.hbm_to_vmem [thread:$0]  %s609_s4, 32, %s67_s16, [#allocation8]  }
  0x36   :  { %520 = dma.done.wait [#allocation3], 128  }
  0x37   :  { %521 = vsyncadd [#allocation3], 4294967168 }
  0x38   :  { %522 = dma.done.wait [#allocation5], 768  }
  0x39   :  { %523 = vsyncadd [#allocation5], 4294966528 }
  0x3a   :  { %524 = dma.done.wait [#allocation8], 544  }
  0x3b   :  { %525 = vsyncadd [#allocation8], 4294966752  ;;  %v533_v0 = vmov 0.0   ;;  %vm534_vm0 = vmmov 0   ;;  %v90_v1 = vld [vmem:[#allocation4 + $0x8] sm:$0xff]  ;;  %v89_v2 = vld [vmem:[#allocation4] sm:$0xff]  ;;  %v91_v9 = vlaneseq }
  0x3c   :  { %378 = vmatprep.subr.mxu0 %v533_v0  ;;  %382 = vmatprep.mubr.msk.f32.mxu0 %vm534_vm0, %v533_v0  ;;  %v87_v3 = vld [vmem:[#allocation2] sm:$0xff]  ;;  %vm95_vm1 = vcmask 130048   ;;  %v173_v4 = vld [vmem:[#allocation6 + $0x18] sm:$0xff]  ;;  %v172_v5 = vld [vmem:[#allocation6 + $0x10] sm:$0xff]  ;;  %vm178_vm2 = vcmask 261120  }
  0x3d   :  { %385 = vmatprep.subr.mxu1 %v533_v0  ;;  %393 = vmatprep.mubr.msk.f32.mxu1 %vm534_vm0, %v533_v0  ;;  %v171_v6 = vld [vmem:[#allocation6 + $0x8] sm:$0xff]  ;;  %v170_v7 = vld [vmem:[#allocation6] sm:$0xff]  ;;  %v256_v8 = vld [vmem:[#allocation7 + $0x18] sm:$0xff]  ;;  %v92_v10 = vshrl.u32 %v91_v9, 7 }
  0x3e   :  { %379 = vmatpush3.msra.mxu0 %v90_v1  ;;  %386 = vmatpush3.msra.mxu1 %v173_v4  ;;  %v88_v12 = vld [vmem:[#allocation9] sm:$0x3]  ;;  %v255_v18 = vld [vmem:[#allocation7 + $0x10] sm:$0xff]  ;;  %v254_v19 = vld [vmem:[#allocation7 + $0x8] sm:$0xff] }
  0x3f   :  { %380 = vmatprep.subr.mxu0 %v533_v0  ;;  %387 = vmatprep.subr.mxu1 %v533_v0  ;;  %v93_v11 = vsub.s32 0, %v92_v10  ;;  %v253_v20 = vld [vmem:[#allocation7] sm:$0xff]  ;;  %v176_v21 = vsub.s32 1, %v92_v10  ;;  %v363_v27 = vld [vmem:[%s610_s5] ss:$0 sm:$0xff] }
  0x40   :  { %381 = vmatpush3.msra.mxu0 %v89_v2  ;;  %388 = vmatpush3.msra.mxu1 %v172_v5 }
  0x41   :  { %383 = vmatmul.mubr.msk.f32.vlgmr.msra.gmra.mxu0 %vm95_vm1, %v87_v3  ;;  %396 = vmatprep.subr.mxu0 %v533_v0  ;;  %v94_v13 = vrot.slane %v88_v12, %v93_v11  ;;  %v177_v22 = vrot.slane %v88_v12, %v176_v21 }
  0x42   :  { %404 = vmatprep.mubr.msk.f32.mxu0 %vm534_vm0, %v533_v0  ;;  %389 = vmatprep.subr.mxu1 %v533_v0 }
  0x43   :  { %390 = vmatpush3.msra.mxu1 %v171_v6  ;;  %397 = vmatpush3.msra.mxu0 %v256_v8 }
  0x44   :  { %391 = vmatprep.subr.mxu1 %v533_v0  ;;  %398 = vmatprep.subr.mxu0 %v533_v0 }
  0x45   :  { %392 = vmatpush3.msra.mxu1 %v170_v7  ;;  %399 = vmatpush3.msra.mxu0 %v255_v18 }
  0x46   :  { %400 = vmatprep.subr.mxu0 %v533_v0 }
  0x47   :  { %401 = vmatpush3.msra.mxu0 %v254_v19 }
  0x48   :  { %402 = vmatprep.subr.mxu0 %v533_v0 }
  0x49   :  { %403 = vmatpush3.msra.mxu0 %v253_v20 }
 0x101   :  { %v165_v14 = vpop.f32.mrf.mxu0 }
 0x102   :  { %v166_v15 = vadd.f32 %v165_v14, %v94_v13 }
 0x103   :  { %v384_v16 = vpop.f32.mrf.mxu0 }
 0x104   :  { %v169_v17 = vmax.f32 %v166_v15, 0.0 }
 0x106   :  { %394 = vmatmul.mubr.msk.f32.vlgmr.msra.gmra.mxu1 %vm178_vm2, %v169_v17 }
 0x1c6   :  { %v248_v23 = vpop.f32.mrf.mxu1 }
 0x1c7   :  { %v249_v24 = vadd.f32 %v248_v23, %v177_v22 }
 0x1c8   :  { %v395_v25 = vpop.f32.mrf.mxu1 }
 0x1c9   :  { %v252_v26 = vmax.f32 %v249_v24, 0.0 }
 0x1cb   :  { %405 = vmatmul.mubr.msk.f32.vlgmr.msra.gmra.mxu0 %vm178_vm2, %v252_v26 }
 0x28b   :  { %v333_v28 = vpop.f32.mrf.mxu0 }
 0x28c   :  { %v334_v29 = vadd.f32 %v363_v27, %v333_v28 }
 0x28d   :  { %v406_v30 = vpop.f32.mrf.mxu0 }
 0x28e   :  { %v338_v31 = vand.u32 2147483647, %v334_v29  ;;  %v337_v42 = vmax.f32 %v334_v29, 0.0 }
 0x290   :  { %v339_v32 = vsub.f32 0.0, %v338_v31 }
 0x292   :  { %v340_v33 = vmul.f32 1.442695, %v339_v32 }
 0x294   :  { %416 = vpow2.f32 %v340_v33 }
 0x2a1   :  { %v417_v34 = vpop.eup %416 }
 0x2a2   :  { %v342_v35 = vadd.f32 1.0, %v417_v34  ;;  %v345_v36 = vmul.f32 -0.5, %v417_v34  ;;  %v348_v38 = vand.u32 2147483647, %v417_v34 }
 0x2a4   :  { %418 = vlog2.f32 %v342_v35  ;;  %v346_v37 = vadd.f32 1.0, %v345_v36  ;;  %vm349_vm3 = vcmp.lt.f32.partialorder %v348_v38, 0.0004427343 }
 0x2a6   :  { %v347_v41 = vmul.f32 %v417_v34, %v346_v37 }
 0x2b1   :  { %v419_v39 = vpop.eup %418 }
 0x2b2   :  { %v344_v40 = vmul.f32 0.6931472, %v419_v39 }
 0x2b4   :  { %v350_v43 = vsel %vm349_vm3, %v347_v41, %v344_v40 }
 0x2b5   :  { %v351_v44 = vadd.f32 %v350_v43, %v337_v42 }
 0x2b7   :  { %v352_v45 = vadd.f32 1.0, %v351_v44 }
 0x2b9   :  { %353 = vst [vmem:[%s611_s6] sm:$0xff] %v352_v45 }
 0x2ba   :  { %358 = vsyncpa [#allocation3], 1 }
 0x2bb   :  { %359 = vsyncpa [#allocation5], 1 }
 0x2bc   :  { %360 = vsyncpa [#allocation8], 1 }

</bundles_post_ra>
